<compile_context>
chip_gen: v6e
topology: v6e:2x2x1
jax: 0.10.0
libtpu: 0.0.40
codegen_flags: <defaults>
</compile_context>

<pallas_src>
import functools

import jax
import jax.numpy as jnp
from jax.experimental import pallas as pl
from jax.experimental.pallas import tpu as pltpu


def _round_up(x, m):
    return (x + m - 1) // m * m


def _softmax(x):
    # softmax over last axis (matches torch.nn.Softmax(dim=1) for 2-D x)
    m = jnp.max(x, axis=-1, keepdims=True)
    e = jnp.exp(x - m)
    return e * pl.reciprocal(jnp.sum(e, axis=-1, keepdims=True), approx=True)


def cnn_fusion_kernel(
    bert_ref,                      # [TB, TS, D_bert] bf16
    vgg_ref,                       # [TB, F_vgg]      bf16
    fc2_w_ref, fc2_b_ref,          # [D_bert, H] bf16, [1, H] f32
    imgfc_w_ref, imgfc_b_ref,      # [F_vgg, H]  bf16, [1, H] f32
    cd_w_text_ref, cd_w_img_ref, cd_b_ref,   # [H, H+2] bf16 x2, [1, H+2] f32
    d2_w_ref, d2_b_ref,            # [H, E] bf16, [1, E] f32
    out_ref,                       # [TB, OUT_PAD] f32  (class | domain | pad)
    pool_acc,                      # scratch [TB, D_bert] f32
    *,
    seq_len, hidden, n_class, event_num,
):
    f32 = jnp.float32
    bf16 = jnp.bfloat16
    s = pl.program_id(1)

    @pl.when(s == 0)
    def _():
        pool_acc[...] = jnp.zeros_like(pool_acc)

    # Streamed mean-pool over the sequence; accumulate the sum in f32.
    # (Zero-padded sequence rows contribute nothing; we divide by the true S.)
    pool_acc[...] += jnp.sum(bert_ref[...].astype(f32), axis=1)

    @pl.when(s == pl.num_programs(1) - 1)
    def _():
        inv_s = 1.0 / float(seq_len)
        text_pooled = pool_acc[...] * inv_s                        # [TB, D_bert] f32

        # ---- text branch: fc2 + ReLU -------------------------------------
        text = jnp.dot(text_pooled.astype(bf16), fc2_w_ref[...],
                       preferred_element_type=f32) + fc2_b_ref[...]
        text = jnp.maximum(text, 0.0)

        # ---- image branch: image_fc1 + ReLU -------------------------------
        image = jnp.dot(vgg_ref[...], imgfc_w_ref[...],
                        preferred_element_type=f32) + imgfc_b_ref[...]
        image = jnp.maximum(image, 0.0)

        # ---- cat(text, image) folded into split weights; class fc and
        # ---- domain fc1 fused into one matmul pair (columns = d1 | c) ------
        fused = (jnp.dot(text.astype(bf16), cd_w_text_ref[...],
                         preferred_element_type=f32)
                 + jnp.dot(image.astype(bf16), cd_w_img_ref[...],
                           preferred_element_type=f32)
                 + cd_b_ref[...])                                  # [TB, H+2]

        # nn.LeakyReLU(True) has negative_slope == 1.0 -> identity: no op.
        dom_h = fused[:, :hidden]                                  # [TB, H]
        class_logits = fused[:, hidden:hidden + n_class]           # [TB, 2]

        dom_logits = jnp.dot(dom_h.astype(bf16), d2_w_ref[...],
                             preferred_element_type=f32) + d2_b_ref[...]

        class_p = _softmax(class_logits)                           # [TB, 2]
        dom_p = _softmax(dom_logits)                               # [TB, E]

        # Lane-dense packed output: single unmasked store of a 128-wide slab.
        tb, out_pad = out_ref.shape
        pad = out_pad - (n_class + event_num)
        pieces = [class_p, dom_p]
        if pad > 0:
            pieces.append(jnp.zeros((tb, pad), f32))
        out_ref[...] = jnp.concatenate(pieces, axis=1)


def cnn_fusion_forward(bert_feats, vgg_feats, params, *, tb=8):
    """Fused forward pass. `params` is a dict of f32 weight arrays."""
    B, S, D_bert = bert_feats.shape
    F_vgg = vgg_feats.shape[1]
    H = params["fc2_w"].shape[1]
    E = params["d2_w"].shape[1]
    N_CLASS = params["c_wt"].shape[1]

    bf16, f32 = jnp.bfloat16, jnp.float32

    TB = tb                                   # sublane-filling batch tile
    B_pad = _round_up(B, TB)
    TS = min(128, _round_up(S, 8))            # seq tile (multiple of 8 sublanes)
    S_pad = _round_up(S, TS)
    OUT_PAD = _round_up(N_CLASS + E, 128)     # lane-dense packed output width

    # Pad (zeros don't perturb the seq-sum; we divide by the true S) + cast.
    bert = jnp.pad(bert_feats.astype(bf16),
                   ((0, B_pad - B), (0, S_pad - S), (0, 0)))
    vgg = jnp.pad(vgg_feats.astype(bf16), ((0, B_pad - B), (0, 0)))

    # Pack (domain-fc1 | class-fc1) so only one matmul per activation branch.
    cd_wt = jnp.concatenate([params["d1_wt"], params["c_wt"]], axis=1).astype(bf16)
    cd_wi = jnp.concatenate([params["d1_wi"], params["c_wi"]], axis=1).astype(bf16)
    cd_b = jnp.concatenate([params["d1_b"], params["c_b"]], axis=1).astype(f32)

    inputs = (
        bert, vgg,
        params["fc2_w"].astype(bf16), params["fc2_b"].astype(f32),
        params["imgfc_w"].astype(bf16), params["imgfc_b"].astype(f32),
        cd_wt, cd_wi, cd_b,
        params["d2_w"].astype(bf16), params["d2_b"].astype(f32),
    )

    def const_spec(shape):
        # Weights/biases: one block == whole array, fetched once (block index
        # is constant across the grid so the pipeline skips re-DMA).
        return pl.BlockSpec(shape, lambda b, s: tuple(0 for _ in shape))

    in_specs = [
        pl.BlockSpec((TB, TS, D_bert), lambda b, s: (b, s, 0)),   # bert tile
        pl.BlockSpec((TB, F_vgg), lambda b, s: (b, 0)),           # vgg tile
        const_spec((D_bert, H)), const_spec((1, H)),              # fc2
        const_spec((F_vgg, H)), const_spec((1, H)),               # image_fc1
        const_spec((H, H + N_CLASS)), const_spec((H, H + N_CLASS)),
        const_spec((1, H + N_CLASS)),                             # fused d1|c
        const_spec((H, E)), const_spec((1, E)),                   # d_fc2
    ]

    kernel = functools.partial(
        cnn_fusion_kernel, seq_len=S, hidden=H, n_class=N_CLASS, event_num=E)

    out = pl.pallas_call(
        kernel,
        out_shape=jax.ShapeDtypeStruct((B_pad, OUT_PAD), f32),
        grid_spec=pltpu.PrefetchScalarGridSpec(
            num_scalar_prefetch=0,
            grid=(B_pad // TB, S_pad // TS),
            in_specs=in_specs,
            out_specs=pl.BlockSpec((TB, OUT_PAD), lambda b, s: (b, 0)),
            scratch_shapes=[pltpu.VMEM((TB, D_bert), f32)],
        ),
        compiler_params=pltpu.CompilerParams(
            dimension_semantics=("parallel", "arbitrary"),
            vmem_limit_bytes=32 * 1024 * 1024),
    )(*inputs)

    class_out = out[:B, :N_CLASS]
    domain_out = out[:B, N_CLASS:N_CLASS + E]
    return class_out, domain_out


def init_params(key, d_bert, f_vgg, hidden, event_num):
    """Deterministic synthetic parameter init (shapes from CNN_Fusion.__init__)."""
    ks = jax.random.split(key, 10)
    u = lambda k, shape, s: (jax.random.uniform(k, shape, jnp.float32) - 0.5) * 2.0 * s
    return {
        # fc2: Linear(bert_hidden_dim, hidden_dim)
        "fc2_w":  u(ks[0], (d_bert, hidden), 0.1),
        "fc2_b":  u(ks[1], (1, hidden), 0.1),
        # image_fc1: Linear(num_ftrs, hidden_dim)
        "imgfc_w": u(ks[2], (f_vgg, hidden), 0.1),
        "imgfc_b": u(ks[3], (1, hidden), 0.1),
        # class_classifier c_fc1: Linear(2*hidden, 2) -> text / image halves
        "c_wt": u(ks[4], (hidden, 2), 0.1),
        "c_wi": u(ks[5], (hidden, 2), 0.1),
        "c_b":  u(ks[6], (1, 2), 0.1),
        # domain_classifier d_fc1: Linear(2*hidden, hidden) -> text / image halves
        "d1_wt": u(ks[7], (hidden, hidden), 0.1),
        "d1_wi": u(ks[8], (hidden, hidden), 0.1),
        "d1_b":  jnp.zeros((1, hidden), jnp.float32),
        # domain_classifier d_fc2: Linear(hidden, event_num)
        "d2_w": u(ks[9], (hidden, event_num), 0.1),
        "d2_b": jnp.zeros((1, event_num), jnp.float32),
    }


def reference_forward(bert_feats, vgg_feats, params):
    """Pure-JAX f32 reference of CNN_Fusion.forward (backbones factored out)."""
    text_pooled = jnp.mean(bert_feats, axis=1)
    text = jax.nn.relu(text_pooled @ params["fc2_w"] + params["fc2_b"])
    image = jax.nn.relu(vgg_feats @ params["imgfc_w"] + params["imgfc_b"])
    class_logits = text @ params["c_wt"] + image @ params["c_wi"] + params["c_b"]
    h = text @ params["d1_wt"] + image @ params["d1_wi"] + params["d1_b"]
    # nn.LeakyReLU(True): negative_slope == 1.0 -> identity in the forward pass
    dom_logits = h @ params["d2_w"] + params["d2_b"]
    return (jax.nn.softmax(class_logits, axis=-1),
            jax.nn.softmax(dom_logits, axis=-1))


if __name__ == "__main__":
    # Small shapes consistent with the module's forward:
    B, S = 2, 8           # batch, text sequence length
    D_BERT = 32           # args.bert_hidden_dim (scaled down from 768)
    F_VGG = 64            # vgg19 classifier out_features (scaled down from 1000)
    HIDDEN = 32           # args.hidden_dim
    EVENT_NUM = 4         # args.event_num

    key = jax.random.PRNGKey(0)
    k_bert, k_vgg, k_params = jax.random.split(key, 3)

    # TODO(synk): pretrained frozen BERT / VGG19 backbones are external feature
    # extractors; their outputs are modeled as deterministic synthetic features.
    bert_feats = jax.random.normal(k_bert, (B, S, D_BERT), jnp.float32)
    vgg_feats = jax.random.normal(k_vgg, (B, F_VGG), jnp.float32)
    # `mask` is accepted by the PyTorch forward but never used; omitted here.

    params = init_params(k_params, D_BERT, F_VGG, HIDDEN, EVENT_NUM)

    class_out, domain_out = cnn_fusion_forward(bert_feats, vgg_feats, params)
    jax.block_until_ready((class_out, domain_out))

    assert class_out.shape == (B, 2)
    assert domain_out.shape == (B, EVENT_NUM)

    # softmax rows sum to ~1 (approx reciprocal in softmax -> loose tolerance)
    assert jnp.allclose(jnp.sum(class_out, axis=1), 1.0, atol=5e-3)
    assert jnp.allclose(jnp.sum(domain_out, axis=1), 1.0, atol=5e-3)

    # match the pure-JAX f32 reference (bf16 matmul traffic -> loose tolerance)
    ref_class, ref_domain = reference_forward(bert_feats, vgg_feats, params)
    assert jnp.allclose(class_out, ref_class, atol=3e-2)
    assert jnp.allclose(domain_out, ref_domain, atol=3e-2)

    print("KERNEL_OK")
</pallas_src>

<mosaic_0001>
module attributes {stable_mosaic.version = 11 : i64} {
  func.func @cnn_fusion_kernel(%arg0: i32, %arg1: i32, %arg2: memref<8x8x32xbf16, #tpu.memory_space<vmem>>, %arg3: memref<8x64xbf16, #tpu.memory_space<vmem>>, %arg4: memref<32x32xbf16, #tpu.memory_space<vmem>>, %arg5: memref<1x32xf32, #tpu.memory_space<vmem>>, %arg6: memref<64x32xbf16, #tpu.memory_space<vmem>>, %arg7: memref<1x32xf32, #tpu.memory_space<vmem>>, %arg8: memref<32x34xbf16, #tpu.memory_space<vmem>>, %arg9: memref<32x34xbf16, #tpu.memory_space<vmem>>, %arg10: memref<1x34xf32, #tpu.memory_space<vmem>>, %arg11: memref<32x4xbf16, #tpu.memory_space<vmem>>, %arg12: memref<1x4xf32, #tpu.memory_space<vmem>>, %arg13: memref<8x128xf32, #tpu.memory_space<vmem>>, %arg14: memref<8x32xf32, #tpu.memory_space<vmem>>) attributes {dimension_semantics = [#tpu.dimension_semantics<parallel>, #tpu.dimension_semantics<arbitrary>], iteration_bounds = array<i64: 1, 1>, scalar_prefetch = 0 : i64, scratch_operands = 1 : i64, tpu.core_type = #tpu.core_type<tc>, window_params = [{transform_indices = @transform_0, window_bounds = array<i64: 8, 8, 32>}, {transform_indices = @transform_1, window_bounds = array<i64: 8, 64>}, {pipeline_mode = #tpu.pipeline_mode<synchronous>, transform_indices = @transform_2, window_bounds = array<i64: 32, 32>}, {pipeline_mode = #tpu.pipeline_mode<synchronous>, transform_indices = @transform_3, window_bounds = array<i64: 1, 32>}, {pipeline_mode = #tpu.pipeline_mode<synchronous>, transform_indices = @transform_4, window_bounds = array<i64: 64, 32>}, {pipeline_mode = #tpu.pipeline_mode<synchronous>, transform_indices = @transform_5, window_bounds = array<i64: 1, 32>}, {pipeline_mode = #tpu.pipeline_mode<synchronous>, transform_indices = @transform_6, window_bounds = array<i64: 32, 34>}, {pipeline_mode = #tpu.pipeline_mode<synchronous>, transform_indices = @transform_7, window_bounds = array<i64: 32, 34>}, {pipeline_mode = #tpu.pipeline_mode<synchronous>, transform_indices = @transform_8, window_bounds = array<i64: 1, 34>}, {pipeline_mode = #tpu.pipeline_mode<synchronous>, transform_indices = @transform_9, window_bounds = array<i64: 32, 4>}, {pipeline_mode = #tpu.pipeline_mode<synchronous>, transform_indices = @transform_10, window_bounds = array<i64: 1, 4>}, {transform_indices = @transform_11, window_bounds = array<i64: 8, 128>}]} {
    %c0_i32 = arith.constant 0 : i32
    %0 = arith.cmpi eq, %arg1, %c0_i32 : i32
    %1 = arith.extui %0 : i1 to i32
    %c0_i32_0 = arith.constant 0 : i32
    %2 = arith.cmpi ne, %1, %c0_i32_0 : i32
    scf.if %2 {
      %cst_9 = arith.constant 0.000000e+00 : f32
      %12 = vector.broadcast %cst_9 : f32 to vector<8x32xf32>
      %c0_10 = arith.constant 0 : index
      %c0_11 = arith.constant 0 : index
      %13 = vector.load %arg14[%c0_10, %c0_11] : memref<8x32xf32, #tpu.memory_space<vmem>>, vector<8x32xf32>
      tpu.vector_store %arg14[%c0_10, %c0_11], %12 {strides = array<i32>} : memref<8x32xf32, #tpu.memory_space<vmem>>, vector<8x32xf32>,
    } else {
    }
    %c0 = arith.constant 0 : index
    %c0_1 = arith.constant 0 : index
    %3 = vector.load %arg14[%c0, %c0_1] : memref<8x32xf32, #tpu.memory_space<vmem>>, vector<8x32xf32>
    %c0_2 = arith.constant 0 : index
    %c0_3 = arith.constant 0 : index
    %c0_4 = arith.constant 0 : index
    %4 = vector.load %arg2[%c0_2, %c0_3, %c0_4] : memref<8x8x32xbf16, #tpu.memory_space<vmem>>, vector<8x8x32xbf16>
    %5 = arith.extf %4 : vector<8x8x32xbf16> to vector<8x8x32xf32>
    %cst = arith.constant dense<0.000000e+00> : vector<8x32xf32>
    %6 = vector.multi_reduction <add>, %5, %cst [1] : vector<8x8x32xf32> to vector<8x32xf32>
    %7 = arith.addf %3, %6 : vector<8x32xf32>
    %c0_5 = arith.constant 0 : index
    %c0_6 = arith.constant 0 : index
    %8 = vector.load %arg14[%c0_5, %c0_6] : memref<8x32xf32, #tpu.memory_space<vmem>>, vector<8x32xf32>
    tpu.vector_store %arg14[%c0_5, %c0_6], %7 {strides = array<i32>} : memref<8x32xf32, #tpu.memory_space<vmem>>, vector<8x32xf32>,
    %c0_i32_7 = arith.constant 0 : i32
    %9 = arith.cmpi eq, %arg1, %c0_i32_7 : i32
    %10 = arith.extui %9 : i1 to i32
    %c0_i32_8 = arith.constant 0 : i32
    %11 = arith.cmpi ne, %10, %c0_i32_8 : i32
    scf.if %11 {
      %c0_9 = arith.constant 0 : index
      %c0_10 = arith.constant 0 : index
      %12 = vector.load %arg14[%c0_9, %c0_10] : memref<8x32xf32, #tpu.memory_space<vmem>>, vector<8x32xf32>
      %cst_11 = arith.constant 1.250000e-01 : f32
      %13 = vector.broadcast %cst_11 : f32 to vector<8x32xf32>
      %14 = arith.mulf %12, %13 : vector<8x32xf32>
      %15 = arith.truncf %14 : vector<8x32xf32> to vector<8x32xbf16>
      %c0_12 = arith.constant 0 : index
      %c0_13 = arith.constant 0 : index
      %16 = vector.load %arg4[%c0_12, %c0_13] : memref<32x32xbf16, #tpu.memory_space<vmem>>, vector<32x32xbf16>
      %cst_14 = arith.constant dense<0.000000e+00> : vector<8x32xf32>
      %17 = tpu.matmul %15, %16, %cst_14 {dimension_numbers = #tpu.dot_dimension_numbers<[1], [0], [0], [1], [0, 0, 1, 1], [], []>} : vector<8x32xbf16>, vector<32x32xbf16>, vector<8x32xf32> -> vector<8x32xf32>
      %c0_15 = arith.constant 0 : index
      %c0_16 = arith.constant 0 : index
      %18 = vector.load %arg5[%c0_15, %c0_16] : memref<1x32xf32, #tpu.memory_space<vmem>>, vector<1x32xf32>
      %19 = vector.broadcast %18 : vector<1x32xf32> to vector<8x32xf32>
      %20 = arith.addf %17, %19 : vector<8x32xf32>
      %cst_17 = arith.constant 0.000000e+00 : f32
      %21 = vector.broadcast %cst_17 : f32 to vector<8x32xf32>
      %22 = arith.maximumf %20, %21 : vector<8x32xf32>
      %c0_18 = arith.constant 0 : index
      %c0_19 = arith.constant 0 : index
      %23 = vector.load %arg3[%c0_18, %c0_19] : memref<8x64xbf16, #tpu.memory_space<vmem>>, vector<8x64xbf16>
      %c0_20 = arith.constant 0 : index
      %c0_21 = arith.constant 0 : index
      %24 = vector.load %arg6[%c0_20, %c0_21] : memref<64x32xbf16, #tpu.memory_space<vmem>>, vector<64x32xbf16>
      %cst_22 = arith.constant dense<0.000000e+00> : vector<8x32xf32>
      %25 = tpu.matmul %23, %24, %cst_22 {dimension_numbers = #tpu.dot_dimension_numbers<[1], [0], [0], [1], [0, 0, 1, 1], [], []>} : vector<8x64xbf16>, vector<64x32xbf16>, vector<8x32xf32> -> vector<8x32xf32>
      %c0_23 = arith.constant 0 : index
      %c0_24 = arith.constant 0 : index
      %26 = vector.load %arg7[%c0_23, %c0_24] : memref<1x32xf32, #tpu.memory_space<vmem>>, vector<1x32xf32>
      %27 = vector.broadcast %26 : vector<1x32xf32> to vector<8x32xf32>
      %28 = arith.addf %25, %27 : vector<8x32xf32>
      %cst_25 = arith.constant 0.000000e+00 : f32
      %29 = vector.broadcast %cst_25 : f32 to vector<8x32xf32>
      %30 = arith.maximumf %28, %29 : vector<8x32xf32>
      %31 = arith.truncf %22 : vector<8x32xf32> to vector<8x32xbf16>
      %c0_26 = arith.constant 0 : index
      %c0_27 = arith.constant 0 : index
      %32 = vector.load %arg8[%c0_26, %c0_27] : memref<32x34xbf16, #tpu.memory_space<vmem>>, vector<32x34xbf16>
      %cst_28 = arith.constant dense<0.000000e+00> : vector<8x34xf32>
      %33 = tpu.matmul %31, %32, %cst_28 {dimension_numbers = #tpu.dot_dimension_numbers<[1], [0], [0], [1], [0, 0, 1, 1], [], []>} : vector<8x32xbf16>, vector<32x34xbf16>, vector<8x34xf32> -> vector<8x34xf32>
      %34 = arith.truncf %30 : vector<8x32xf32> to vector<8x32xbf16>
      %c0_29 = arith.constant 0 : index
      %c0_30 = arith.constant 0 : index
      %35 = vector.load %arg9[%c0_29, %c0_30] : memref<32x34xbf16, #tpu.memory_space<vmem>>, vector<32x34xbf16>
      %cst_31 = arith.constant dense<0.000000e+00> : vector<8x34xf32>
      %36 = tpu.matmul %34, %35, %cst_31 {dimension_numbers = #tpu.dot_dimension_numbers<[1], [0], [0], [1], [0, 0, 1, 1], [], []>} : vector<8x32xbf16>, vector<32x34xbf16>, vector<8x34xf32> -> vector<8x34xf32>
      %37 = arith.addf %33, %36 : vector<8x34xf32>
      %c0_32 = arith.constant 0 : index
      %c0_33 = arith.constant 0 : index
      %38 = vector.load %arg10[%c0_32, %c0_33] : memref<1x34xf32, #tpu.memory_space<vmem>>, vector<1x34xf32>
      %39 = vector.broadcast %38 : vector<1x34xf32> to vector<8x34xf32>
      %40 = arith.addf %37, %39 : vector<8x34xf32>
      %41 = vector.extract_strided_slice %40 {offsets = [0, 0], sizes = [8, 32], strides = [1, 1]} : vector<8x34xf32> to vector<8x32xf32>
      %42 = vector.extract_strided_slice %40 {offsets = [0, 32], sizes = [8, 2], strides = [1, 1]} : vector<8x34xf32> to vector<8x2xf32>
      %43 = arith.truncf %41 : vector<8x32xf32> to vector<8x32xbf16>
      %c0_34 = arith.constant 0 : index
      %c0_35 = arith.constant 0 : index
      %44 = vector.load %arg11[%c0_34, %c0_35] : memref<32x4xbf16, #tpu.memory_space<vmem>>, vector<32x4xbf16>
      %cst_36 = arith.constant dense<0.000000e+00> : vector<8x4xf32>
      %45 = tpu.matmul %43, %44, %cst_36 {dimension_numbers = #tpu.dot_dimension_numbers<[1], [0], [0], [1], [0, 0, 1, 1], [], []>} : vector<8x32xbf16>, vector<32x4xbf16>, vector<8x4xf32> -> vector<8x4xf32>
      %c0_37 = arith.constant 0 : index
      %c0_38 = arith.constant 0 : index
      %46 = vector.load %arg12[%c0_37, %c0_38] : memref<1x4xf32, #tpu.memory_space<vmem>>, vector<1x4xf32>
      %47 = vector.broadcast %46 : vector<1x4xf32> to vector<8x4xf32>
      %48 = arith.addf %45, %47 : vector<8x4xf32>
      %cst_39 = arith.constant dense<0xFF800000> : vector<8xf32>
      %49 = vector.multi_reduction <maximumf>, %42, %cst_39 [1] : vector<8x2xf32> to vector<8xf32>
      %50 = vector.shape_cast %49 : vector<8xf32> to vector<8x1xf32>
      %51 = vector.broadcast %50 : vector<8x1xf32> to vector<8x2xf32>
      %52 = arith.subf %42, %51 : vector<8x2xf32>
      %53 = math.exp %52 : vector<8x2xf32>
      %cst_40 = arith.constant dense<0.000000e+00> : vector<8xf32>
      %54 = vector.multi_reduction <add>, %53, %cst_40 [1] : vector<8x2xf32> to vector<8xf32>
      %55 = vector.shape_cast %54 : vector<8xf32> to vector<8x1xf32>
      %56 = tpu.reciprocal %55 {approx = true} : vector<8x1xf32> -> vector<8x1xf32>
      %57 = vector.broadcast %56 : vector<8x1xf32> to vector<8x2xf32>
      %58 = arith.mulf %53, %57 : vector<8x2xf32>
      %cst_41 = arith.constant dense<0xFF800000> : vector<8xf32>
      %59 = vector.multi_reduction <maximumf>, %48, %cst_41 [1] : vector<8x4xf32> to vector<8xf32>
      %60 = vector.shape_cast %59 : vector<8xf32> to vector<8x1xf32>
      %61 = vector.broadcast %60 : vector<8x1xf32> to vector<8x4xf32>
      %62 = arith.subf %48, %61 : vector<8x4xf32>
      %63 = math.exp %62 : vector<8x4xf32>
      %cst_42 = arith.constant dense<0.000000e+00> : vector<8xf32>
      %64 = vector.multi_reduction <add>, %63, %cst_42 [1] : vector<8x4xf32> to vector<8xf32>
      %65 = vector.shape_cast %64 : vector<8xf32> to vector<8x1xf32>
      %66 = tpu.reciprocal %65 {approx = true} : vector<8x1xf32> -> vector<8x1xf32>
      %67 = vector.broadcast %66 : vector<8x1xf32> to vector<8x4xf32>
      %68 = arith.mulf %63, %67 : vector<8x4xf32>
      %cst_43 = arith.constant 0.000000e+00 : f32
      %69 = vector.broadcast %cst_43 : f32 to vector<8x122xf32>
      %70 = tpu.concatenate %58, %68, %69 in 1 : vector<8x2xf32>, vector<8x4xf32>, vector<8x122xf32> -> vector<8x128xf32>
      %c0_44 = arith.constant 0 : index
      %c0_45 = arith.constant 0 : index
      %71 = vector.load %arg13[%c0_44, %c0_45] : memref<8x128xf32, #tpu.memory_space<vmem>>, vector<8x128xf32>
      tpu.vector_store %arg13[%c0_44, %c0_45], %70 {strides = array<i32>} : memref<8x128xf32, #tpu.memory_space<vmem>>, vector<8x128xf32>,
    } else {
    }
    return
  }
  func.func @transform_0(%arg0: i32, %arg1: i32) -> (i32, i32, i32) {
    %c0_i32 = arith.constant 0 : i32
    %c0_i32_0 = arith.constant 0 : i32
    return %arg0, %arg1, %c0_i32 : i32, i32, i32
  }
  func.func @transform_1(%arg0: i32, %arg1: i32) -> (i32, i32) {
    %c0_i32 = arith.constant 0 : i32
    %c0_i32_0 = arith.constant 0 : i32
    return %arg0, %c0_i32 : i32, i32
  }
  func.func @transform_2(%arg0: i32, %arg1: i32) -> (i32, i32) {
    %c0_i32 = arith.constant 0 : i32
    %c0_i32_0 = arith.constant 0 : i32
    %c0_i32_1 = arith.constant 0 : i32
    return %c0_i32, %c0_i32_0 : i32, i32
  }
  func.func @transform_3(%arg0: i32, %arg1: i32) -> (i32, i32) {
    %c0_i32 = arith.constant 0 : i32
    %c0_i32_0 = arith.constant 0 : i32
    %c0_i32_1 = arith.constant 0 : i32
    return %c0_i32, %c0_i32_0 : i32, i32
  }
  func.func @transform_4(%arg0: i32, %arg1: i32) -> (i32, i32) {
    %c0_i32 = arith.constant 0 : i32
    %c0_i32_0 = arith.constant 0 : i32
    %c0_i32_1 = arith.constant 0 : i32
    return %c0_i32, %c0_i32_0 : i32, i32
  }
  func.func @transform_5(%arg0: i32, %arg1: i32) -> (i32, i32) {
    %c0_i32 = arith.constant 0 : i32
    %c0_i32_0 = arith.constant 0 : i32
    %c0_i32_1 = arith.constant 0 : i32
    return %c0_i32, %c0_i32_0 : i32, i32
  }
  func.func @transform_6(%arg0: i32, %arg1: i32) -> (i32, i32) {
    %c0_i32 = arith.constant 0 : i32
    %c0_i32_0 = arith.constant 0 : i32
    %c0_i32_1 = arith.constant 0 : i32
    return %c0_i32, %c0_i32_0 : i32, i32
  }
  func.func @transform_7(%arg0: i32, %arg1: i32) -> (i32, i32) {
    %c0_i32 = arith.constant 0 : i32
    %c0_i32_0 = arith.constant 0 : i32
    %c0_i32_1 = arith.constant 0 : i32
    return %c0_i32, %c0_i32_0 : i32, i32
  }
  func.func @transform_8(%arg0: i32, %arg1: i32) -> (i32, i32) {
    %c0_i32 = arith.constant 0 : i32
    %c0_i32_0 = arith.constant 0 : i32
    %c0_i32_1 = arith.constant 0 : i32
    return %c0_i32, %c0_i32_0 : i32, i32
  }
  func.func @transform_9(%arg0: i32, %arg1: i32) -> (i32, i32) {
    %c0_i32 = arith.constant 0 : i32
    %c0_i32_0 = arith.constant 0 : i32
    %c0_i32_1 = arith.constant 0 : i32
    return %c0_i32, %c0_i32_0 : i32, i32
  }
  func.func @transform_10(%arg0: i32, %arg1: i32) -> (i32, i32) {
    %c0_i32 = arith.constant 0 : i32
    %c0_i32_0 = arith.constant 0 : i32
    %c0_i32_1 = arith.constant 0 : i32
    return %c0_i32, %c0_i32_0 : i32, i32
  }
  func.func @transform_11(%arg0: i32, %arg1: i32) -> (i32, i32) {
    %c0_i32 = arith.constant 0 : i32
    %c0_i32_0 = arith.constant 0 : i32
    return %arg0, %c0_i32 : i32, i32
  }
}

</mosaic_0001>

<bundles_post_ra>
// kernel: tpu_custom_call.1
= control target key start
LH: loop header
LB: loop body
LE: loop exit
PB: predicated region body
PF: predicated region fallthrough
CT: control target
= control target key end

     0   :  { %16 = vsyncpa [#allocation4], 0  ;;  %s953_s0 = inlined_call_operand.vmem [shape: bf16[8,8,32], index: 0, kind: input, shape index: {}]   ;;  %s954_s1 = inlined_call_operand.vmem [shape: bf16[8,64], index: 1, kind: input, shape index: {}]   ;;  %s955_s2 = inlined_call_operand.vmem [shape: bf16[32,32], index: 2, kind: input, shape index: {}]   ;;  %s956_s3 = inlined_call_operand.vmem [shape: f32[1,32], index: 3, kind: input, shape index: {}]   ;;  %s957_s4 = inlined_call_operand.vmem [shape: bf16[64,32], index: 4, kind: input, shape index: {}]   ;;  %s958_s5 = inlined_call_operand.vmem [shape: f32[1,32], index: 5, kind: input, shape index: {}]   ;;  %s959_s6 = inlined_call_operand.hbm [shape: bf16[32,34], index: 6, kind: input, shape index: {}]   ;;  %s960_s7 = inlined_call_operand.hbm [shape: bf16[32,34], index: 7, kind: input, shape index: {}]   ;;  %s961_s8 = inlined_call_operand.vmem [shape: f32[1,34], index: 8, kind: input, shape index: {}]   ;;  %s962_s9 = inlined_call_operand.vmem [shape: bf16[32,4], index: 9, kind: input, shape index: {}]   ;;  %s963_s10 = inlined_call_operand.vmem [shape: f32[1,4], index: 10, kind: input, shape index: {}]   ;;  %s964_s11 = inlined_call_operand.hbm [shape: f32[8,128], index: 11, kind: output, shape index: {}]  }
   0x1   :  { %17 = vsyncpa [#allocation7], 0 }
   0x2   :  { %18 = vsyncpa [#allocation5], 0  ;;  %s779_s17 = smov [#allocation3]  }
   0x3   :  { %s36_s18 = sshll.u32 %s779_s17, 4  ;;  %s37_s18 = int_to_ptr.vmem [resolvable:$true] %s36_s18 }
   0x4   :  { %s721_s19 = scalar_lea.vmem %s37_s18, 256  ;;  %p726_p1 = scmp.lt.s32.totalorder %s37_s18, %s37_s18 }
   0x5   :  { %p722_p0 = scmp.ne.s32.totalorder %s37_s18, %s721_s19  ;;  %p727_p2 = scmp.lt.s32.totalorder %s721_s19, %s721_s19 }
   0x7   :  { %p728_p3 = por %p727_p2, %p726_p1 }
   0x9   :  { %p729_p4 = pnand %p728_p3, %p722_p0 }
   0xb   :  { %732 = shalt.err (!%p729_p4)
}
   0xc   :  { %s780_s20 = smov 64   ;;  %s781_s21 = smov 4  }
   0xd   :  { %42 = dma.hbm_to_vmem [thread:$0]  %s959_s6, 256, %s37_s18, [#allocation4], %s780_s20, %s780_s20, %s781_s21  }
   0xe   :  { %s782_s24 = smov [#allocation6]  }
   0xf   :  { %s48_s25 = sshll.u32 %s782_s24, 4  ;;  %s49_s25 = int_to_ptr.vmem [resolvable:$true] %s48_s25 }
  0x10   :  { %s741_s26 = scalar_lea.vmem %s49_s25, 256  ;;  %p746_p6 = scmp.lt.s32.totalorder %s49_s25, %s49_s25 }
  0x11   :  { %p742_p5 = scmp.ne.s32.totalorder %s49_s25, %s741_s26  ;;  %p747_p7 = scmp.lt.s32.totalorder %s741_s26, %s741_s26 }
  0x13   :  { %p748_p8 = por %p747_p7, %p746_p6 }
  0x15   :  { %p749_p9 = pnand %p748_p8, %p742_p5 }
  0x17   :  { %752 = shalt.err (!%p749_p9)
}
  0x18   :  { %54 = dma.hbm_to_vmem [thread:$0]  %s960_s7, 256, %s49_s25, [#allocation7], %s780_s20, %s780_s20, %s781_s21  }
  0x19   :  { %773 = dma.done.wait [#allocation4], 256  }
  0x1a   :  { %774 = vsyncadd [#allocation4], 4294967040 }
  0x1b   :  { %775 = dma.done.wait [#allocation7], 256  }
  0x1c   :  { %776 = vsyncadd [#allocation7], 4294967040  ;;  %vm72_vm0 = vcmask 261120   ;;  %v783_v0 = vmov 0.0   ;;  %vm784_vm1 = vmmov 0   ;;  %v693_v1 = vld [vmem:[%s957_s4 + $0x18] sm:$0xff]  }
  0x1d   :  { %648 = vmatprep.subr.bf16.mxu1 %v783_v0  ;;  %656 = vmatprep.mubr.msk.bf16.mxu1 %vm784_vm1, %v783_v0  ;;  %73 = vst.msk [vmem:[#allocation2] sm:$0xff] %vm72_vm0, %v783_v0  ;;  %v694_v2 = vld [vmem:[%s957_s4 + $0x10] sm:$0xff]   ;;  %v697_v3 = vld [vmem:[%s955_s2 + $0x8] sm:$0xff]   ;;  %v698_v5 = vld [vmem:[%s955_s2] sm:$0xff]   ;;  %vm286_vm2 = vcmask 523264   ;;  %vm156_vm3 = vcmask 1041409  }
  0x1e   :  { %640 = vmatprep.subr.bf16.mxu0 %v783_v0  ;;  %644 = vmatprep.mubr.msk.bf16.mxu0 %vm784_vm1, %v783_v0  ;;  %v695_v4 = vld [vmem:[%s957_s4 + $0x8] sm:$0xff]   ;;  %v605_v6 = vld [vmem:[%s953_s0] sm:$0xff]   ;;  %v621_v10 = vld [vmem:[%s953_s0 + $0x10] sm:$0xff]   ;;  %vm158_vm4 = vcmask 1042434   ;;  %vm160_vm5 = vcmask 1043459   ;;  %vm162_vm6 = vcmask 1044484  }
  0x1f   :  { %649 = vmatpush3.bf16.msra.mxu1 %v693_v1  ;;  %641 = vmatpush3.bf16.msra.mxu0 %v697_v3  ;;  %v606_v7 = vunpack.c.l.bf16 %v605_v6  ;;  %v607_v8 = vunpack.c.h.bf16 %v605_v6  ;;  %v620_v9 = vld [vmem:[%s953_s0 + $0x8] sm:$0xff]   ;;  %v622_v11 = vld [vmem:[%s953_s0 + $0x18] sm:$0xff]   ;;  %v696_v12 = vld [vmem:[%s957_s4] sm:$0xff]   ;;  %v614_v15 = vunpack.c.l.bf16 %v621_v10  ;;  %v615_v16 = vunpack.c.h.bf16 %v621_v10  ;;  %s787_s14 = smov [#allocation8]  }
  0x20   :  { %650 = vmatprep.subr.bf16.mxu1 %v783_v0  ;;  %642 = vmatprep.subr.bf16.mxu0 %v783_v0  ;;  %v610_v13 = vunpack.c.l.bf16 %v620_v9  ;;  %v611_v14 = vunpack.c.h.bf16 %v620_v9  ;;  %v618_v17 = vunpack.c.l.bf16 %v622_v11  ;;  %v619_v18 = vunpack.c.h.bf16 %v622_v11  ;;  %v246_v29 = vld [vmem:[%s954_s1] sm:$0xf]  ;;  %s573_s15 = sshll.u32 %s787_s14, 4  ;;  %s574_s15 = int_to_ptr.vmem [resolvable:$true] %s573_s15 }
  0x21   :  { %v92_v19 = vsel %vm72_vm0, %v606_v7, 0.0  ;;  %v99_v20 = vsel %vm72_vm0, %v607_v8, 0.0  ;;  %v120_v27 = vsel %vm72_vm0, %v614_v15, 0.0  ;;  %v127_v28 = vsel %vm72_vm0, %v615_v16, 0.0  ;;  %s753_s16 = scalar_lea.vmem %s574_s15, 128  ;;  %p758_p11 = scmp.lt.s32.totalorder %s574_s15, %s574_s15 }
  0x22   :  { %v93_v21 = vrot.slane %v92_v19, 4  ;;  %v100_v22 = vrot.slane %v99_v20, 4  ;;  %v106_v23 = vsel %vm72_vm0, %v610_v13, 0.0  ;;  %v113_v24 = vsel %vm72_vm0, %v611_v14, 0.0  ;;  %p754_p10 = scmp.ne.s32.totalorder %s574_s15, %s753_s16  ;;  %p759_p12 = scmp.lt.s32.totalorder %s753_s16, %s753_s16 }
  0x23   :  { %651 = vmatpush3.bf16.msra.mxu1 %v694_v2  ;;  %643 = vmatpush3.bf16.msra.mxu0 %v698_v5  ;;  %v107_v25 = vrot.slane %v106_v23, 4  ;;  %v114_v26 = vrot.slane %v113_v24, 4  ;;  %v121_v32 = vrot.slane %v120_v27, 4  ;;  %v128_v33 = vrot.slane %v127_v28, 4 }
  0x24   :  { %652 = vmatprep.subr.bf16.mxu1 %v783_v0  ;;  %v94_v30 = vadd.f32 %v93_v21, %v92_v19  ;;  %v101_v31 = vadd.f32 %v100_v22, %v99_v20  ;;  %660 = vmatprep.subr.bf16.mxu0 %v783_v0  ;;  %v134_v36 = vsel %vm72_vm0, %v618_v17, 0.0  ;;  %v141_v37 = vsel %vm72_vm0, %v619_v18, 0.0  ;;  %v74_v17 = vld [vmem:[#allocation2] sm:$0xff]  ;;  %p760_p13 = por %p759_p12, %p758_p11 }
  0x25   :  { %v108_v34 = vadd.f32 %v107_v25, %v106_v23  ;;  %v115_v35 = vadd.f32 %v114_v26, %v113_v24  ;;  %v122_v40 = vadd.f32 %v121_v32, %v120_v27  ;;  %v129_v41 = vadd.f32 %v128_v33, %v127_v28  ;;  %v699_v25 = vld [vmem:[#allocation6 + $0x8] sm:$0xff]   ;;  %v700_v26 = vld [vmem:[#allocation6] sm:$0xff]   ;;  %v701_v33 = vld [vmem:[#allocation3 + $0x8] sm:$0xff]  }
  0x26   :  { %v95_v38 = vrot.slane %v94_v30, 2  ;;  %v102_v39 = vrot.slane %v101_v31, 2  ;;  %v135_v44 = vrot.slane %v134_v36, 4  ;;  %v142_v45 = vrot.slane %v141_v37, 4  ;;  %v587_v27 = vld [vmem:[%s958_s5] ss:$0 sm:$0xff]  ;;  %p761_p0 = pnand %p760_p13, %p754_p10 }
  0x27   :  { %653 = vmatpush3.bf16.msra.mxu1 %v695_v4  ;;  %v109_v42 = vrot.slane %v108_v34, 2  ;;  %v116_v43 = vrot.slane %v115_v35, 2  ;;  %v123_v48 = vrot.slane %v122_v40, 2  ;;  %v130_v49 = vrot.slane %v129_v41, 2 }
  0x28   :  { %654 = vmatprep.subr.bf16.mxu1 %v783_v0  ;;  %v96_v46 = vadd.f32 %v95_v38, %v94_v30  ;;  %v103_v47 = vadd.f32 %v102_v39, %v101_v31  ;;  %v136_v52 = vadd.f32 %v135_v44, %v134_v36  ;;  %v143_v53 = vadd.f32 %v142_v45, %v141_v37  ;;  %v702_v36 = vld [vmem:[#allocation3] sm:$0xff]   ;;  %v583_v37 = vld [vmem:[%s956_s3] ss:$0 sm:$0xff] }
  0x29   :  { %v110_v50 = vadd.f32 %v109_v42, %v108_v34  ;;  %v117_v51 = vadd.f32 %v116_v43, %v115_v35  ;;  %v124_v56 = vadd.f32 %v123_v48, %v122_v40  ;;  %v131_v57 = vadd.f32 %v130_v49, %v129_v41  ;;  %v703_v45 = vld [vmem:[%s962_s9 + $0x8] sm:$0xff]  }
  0x2a   :  { %v97_v54 = vrot.slane %v96_v46, 1  ;;  %v104_v55 = vrot.slane %v103_v47, 1  ;;  %v137_v60 = vrot.slane %v136_v52, 2  ;;  %v144_v61 = vrot.slane %v143_v53, 2 }
  0x2b   :  { %655 = vmatpush3.bf16.msra.mxu1 %v696_v12  ;;  %v111_v58 = vrot.slane %v110_v50, 1  ;;  %v118_v59 = vrot.slane %v117_v51, 1  ;;  %v125_v1 = vrot.slane %v124_v56, 1  ;;  %v132_v2 = vrot.slane %v131_v57, 1 }
  0x2c   :  { %676 = vmatprep.subr.bf16.mxu1 %v783_v0  ;;  %v98_v62 = vadd.f32 %v97_v54, %v96_v46  ;;  %v105_v63 = vadd.f32 %v104_v55, %v103_v47  ;;  %v138_v5 = vadd.f32 %v137_v60, %v136_v52  ;;  %v145_v6 = vadd.f32 %v144_v61, %v143_v53  ;;  %v704_v46 = vld [vmem:[%s962_s9] sm:$0xff]   ;;  %s785_s9 = smov 96  }
  0x2d   :  { %v112_v3 = vadd.f32 %v111_v58, %v110_v50  ;;  %v119_v4 = vadd.f32 %v118_v59, %v117_v51  ;;  %v126_v7 = vadd.f32 %v125_v1, %v124_v56  ;;  %v133_v8 = vadd.f32 %v132_v2, %v131_v57  ;;  %v599_v52 = vld [vmem:[%s961_s8] ss:$0 sm:$0xff] }
  0x2e   :  { %657 = vmatmul.mubr.msk.bf16.vlgmr.msra.gmra.mxu1 %vm286_vm2, %v246_v29  ;;  %v157_v9 = vsel %vm156_vm3, %v105_v63, %v98_v62  ;;  %v139_v10 = vrot.slane %v138_v5, 1  ;;  %v146_v11 = vrot.slane %v145_v6, 1  ;;  %vm164_vm7 = vcmask 1045509   ;;  %v600_v63 = vld [vmem:[%s963_s10] ss:$0 sm:$0xff]  ;;  %s786_s10 = smov 2  }
  0x2f   :  { %680 = vmatprep.mubr.msk.bf16.mxu1 %vm784_vm1, %v783_v0  ;;  %v159_v12 = vsel %vm158_vm4, %v112_v3, %v157_v9  ;;  %vm166_vm8 = vcmask 1046534   ;;  %vm168_vm9 = vcmask 1047559   ;;  %677 = vmatpush3.bf16.msra.mxu1 %v703_v45  ;;  %vm526_vm10 = vcmask 277760  }
  0x30   :  { %v161_v13 = vsel %vm160_vm5, %v119_v4, %v159_v12  ;;  %v140_v14 = vadd.f32 %v139_v10, %v138_v5  ;;  %v147_v15 = vadd.f32 %v146_v11, %v145_v6  ;;  %678 = vmatprep.subr.bf16.mxu1 %v783_v0  ;;  %vm543_vm11 = vcmask 31744  }
  0x31   :  { %v163_v16 = vsel %vm162_vm6, %v126_v7, %v161_v13  ;;  %vm537_vm12 = vcmask 15360   ;;  %vm564_vm13 = vcmask 48128  }
  0x32   :  { %v165_v18 = vsel %vm164_vm7, %v133_v8, %v163_v16 }
  0x33   :  { %v167_v19 = vsel %vm166_vm8, %v140_v14, %v165_v18  ;;  %679 = vmatpush3.bf16.msra.mxu1 %v704_v46 }
  0x34   :  { %v169_v20 = vsel %vm168_vm9, %v147_v15, %v167_v19 }
  0x35   :  { %v171_v21 = vadd.f32 %v169_v20, %v74_v17 }
  0x37   :  { %172 = vst.msk [vmem:[#allocation2] sm:$0xff] %vm72_vm0, %v171_v21 }
  0x3e   :  { %v176_v22 = vld [vmem:[#allocation2] sm:$0xff] }
  0x3f   :  { %v177_v23 = vmul.f32 0.125, %v176_v22 }
  0x41   :  { %v178_v24 = vpack.c.bf16 %v177_v23, %v177_v23 }
  0x43   :  { %645 = vmatmul.mubr.msk.bf16.vlgmr.msra.gmra.mxu0 %vm72_vm0, %v178_v24 }
  0x44   :  { %664 = vmatprep.mubr.msk.bf16.mxu0 %vm784_vm1, %v783_v0  ;;  %661 = vmatpush3.bf16.msra.mxu0 %v699_v25 }
  0x45   :  { %662 = vmatprep.subr.bf16.mxu0 %v783_v0 }
  0x48   :  { %663 = vmatpush3.bf16.msra.mxu0 %v700_v26 }
  0x49   :  { %668 = vmatprep.subr.bf16.mxu0 %v783_v0 }
  0xee   :  { %v324_v28 = vpop.f32.mrf.mxu1 }
  0xef   :  { %v325_v29 = vadd.f32 %v587_v27, %v324_v28 }
  0xf0   :  { %v658_v30 = vpop.f32.mrf.mxu1 }
  0xf1   :  { %v330_v31 = vmax.f32 %v325_v29, 0.0 }
  0xf2   :  { %v327_v32 = vpop.f32.mrf.mxu1 }
  0xf3   :  { %v336_v34 = vpack.c.bf16 %v330_v31, %v330_v31 }
  0xf4   :  { %v659_v35 = vpop.f32.mrf.mxu1 }
  0xf5   :  { %665 = vmatmul.mubr.msk.bf16.vlgmr.msra.gmra.mxu0 %vm72_vm0, %v336_v34 }
  0xf6   :  { %669 = vmatpush3.bf16.msra.mxu0 %v701_v33  ;;  %672 = vmatprep.mubr.msk.bf16.mxu0 %vm784_vm1, %v783_v0 }
  0xf7   :  { %670 = vmatprep.subr.bf16.mxu0 %v783_v0 }
  0xfa   :  { %671 = vmatpush3.bf16.msra.mxu0 %v702_v36 }
 0x103   :  { %v239_v38 = vpop.f32.mrf.mxu0 }
 0x104   :  { %v240_v39 = vadd.f32 %v583_v37, %v239_v38 }
 0x105   :  { %v646_v40 = vpop.f32.mrf.mxu0 }
 0x106   :  { %v245_v41 = vmax.f32 %v240_v39, 0.0 }
 0x107   :  { %v242_v42 = vpop.f32.mrf.mxu0 }
 0x108   :  { %v331_v43 = vpack.c.bf16 %v245_v41, %v245_v41 }
 0x109   :  { %v647_v44 = vpop.f32.mrf.mxu0 }
 0x10a   :  { %673 = vmatmul.mubr.msk.bf16.vlgmr.msra.gmra.mxu0 %vm72_vm0, %v331_v43 }
 0x1b5   :  { %v390_v47 = vpop.f32.mrf.mxu0 }
 0x1b7   :  { %v666_v48 = vpop.f32.mrf.mxu0 }
 0x1b9   :  { %v393_v49 = vpop.f32.mrf.mxu0 }
 0x1bb   :  { %v667_v50 = vpop.f32.mrf.mxu0 }
 0x1ca   :  { %v445_v51 = vpop.f32.mrf.mxu0 }
 0x1cb   :  { %v446_v53 = vadd.f32 %v445_v51, %v390_v47 }
 0x1cc   :  { %v674_v54 = vpop.f32.mrf.mxu0 }
 0x1cd   :  { %v458_v55 = vadd.f32 %v599_v52, %v446_v53 }
 0x1ce   :  { %v448_v56 = vpop.f32.mrf.mxu0 }
 0x1cf   :  { %v459_v0 = vpack.c.bf16 %v458_v55, %v458_v55  ;;  %v527_v57 = vsel %vm526_vm10, %v458_v55, -inf }
 0x1d0   :  { %528 = vmax.xlane.f32.xlu0 %v527_v57  ;;  %v675_v58 = vpop.f32.mrf.mxu0 }
 0x1d1   :  { %681 = vmatmul.mubr.msk.bf16.vlgmr.msra.gmra.mxu1 %vm72_vm0, %v459_v0 }
 0x259   :  { %v529_v59 = vpop.xlane.xlu0 %528 }
 0x25a   :  { %v530_v60 = vsub.f32 %v458_v55, %v529_v59 }
 0x25c   :  { %v531_v61 = vmul.f32 1.442695, %v530_v60 }
 0x25e   :  { %705 = vpow2.f32 %v531_v61 }
 0x26b   :  { %v706_v62 = vpop.eup %705 }
 0x26c   :  { %534 = vrot.lane.b32.xlu1 %v706_v62, %s785_s9 }
 0x291   :  { %v520_v1 = vpop.f32.mrf.mxu1 }
 0x292   :  { %v521_v2 = vadd.f32 %v600_v63, %v520_v1 }
 0x293   :  { %v682_v3 = vpop.f32.mrf.mxu1 }
 0x294   :  { %v544_v4 = vsel %vm543_vm11, %v521_v2, -inf }
 0x295   :  { %545 = vmax.xlane.f32.xlu0 %v544_v4  ;;  %v523_v5 = vpop.f32.mrf.mxu1 }
 0x297   :  { %v683_v6 = vpop.f32.mrf.mxu1 }
 0x2de   :  { %v535_v7 = vpop.permute.xlu1 %534 }
 0x2df   :  { %v538_v8 = vsel %vm537_vm12, %v535_v7, 0.0 }
 0x2e0   :  { %539 = vadd.xlane.f32.xlu1 %v538_v8 }
 0x31e   :  { %v546_v9 = vpop.xlane.xlu0 %545 }
 0x31f   :  { %v547_v10 = vsub.f32 %v521_v2, %v546_v9 }
 0x321   :  { %v548_v11 = vmul.f32 1.442695, %v547_v10 }
 0x323   :  { %707 = vpow2.f32 %v548_v11 }
 0x330   :  { %v708_v12 = vpop.eup %707 }
 0x331   :  { %v550_v13 = vsel %vm543_vm11, %v708_v12, 0.0 }
 0x332   :  { %551 = vadd.xlane.f32.xlu0 %v550_v13 }
 0x369   :  { %v540_v14 = vpop.xlane.xlu1 %539 }
 0x36a   :  { %709 = vrcp.f32 %v540_v14 }
 0x377   :  { %v710_v15 = vpop.eup %709 }
 0x378   :  { %v542_v16 = vmul.f32 %v710_v15, %v706_v62 }
 0x37a   :  { %556 = vrot.lane.b32.xlu0 %v542_v16, %s785_s9 }
 0x3bb   :  { %v552_v17 = vpop.xlane.xlu0 %551 }
 0x3bc   :  { %711 = vrcp.f32 %v552_v17 }
 0x3c9   :  { %v712_v18 = vpop.eup %711 }
 0x3ca   :  { %v554_v19 = vmul.f32 %v712_v18, %v708_v12 }
 0x3cc   :  { %560 = vrot.lane.b32.xlu0 %v554_v19, %s786_s10 }
 0x3ec   :  { %v557_v20 = vpop.permute.xlu0 %556 }
 0x43e   :  { %v561_v21 = vpop.permute.xlu0 %560 }
 0x43f   :  { %v563_v22 = vsel %vm537_vm12, %v557_v20, %v561_v21 }
 0x440   :  { %v565_v23 = vsel %vm564_vm13, %v563_v22, 0.0 }
 0x441   :  { %566 = vst [vmem:[#allocation8] sm:$0xff] %v565_v23 }
 0x442   :  { %764 = shalt.err (!%p761_p0)
}
 0x443   :  { %576 = dma.vmem_to_hbm [thread:$0]  %s574_s15, 128, %s964_s11, [#allocation5]  }
 0x444   :  { %777 = dma.done.wait [#allocation5], 128  }
 0x445   :  { %778 = vsyncadd [#allocation5], 4294967168 }
 0x446   :  { %580 = vsyncpa [#allocation4], 1 }
 0x447   :  { %581 = vsyncpa [#allocation7], 1 }
 0x448   :  { %582 = vsyncpa [#allocation5], 1 }

</bundles_post_ra>
